<compile_context>
chip_gen: v5e
topology: v5e:2x2
jax: 0.10.0
libtpu: 0.0.40
codegen_flags: <defaults>
</compile_context>

<pallas_src>
import math

import jax
import jax.numpy as jnp
from jax.experimental import pallas as pl
from jax.experimental.pallas import tpu as pltpu


# ---------------------------------------------------------------------------
# Parameter / buffer precompute (plain JAX glue — mirrors PE2D.__init__)
# ---------------------------------------------------------------------------
def make_pe_2d(height: int, width: int, dim: int, max_fq: float = 10000.0) -> jnp.ndarray:
    """Returns the (1, dim, H, W) positional-encoding buffer, exactly as PyTorch."""
    assert dim % 4 == 0
    log = math.log(max_fq)
    fqs = jnp.arange(dim // 4, dtype=jnp.float32)
    fqs = jnp.exp(2.0 * (fqs / (dim // 2)) * log)[None, :]           # (1, dim//4)

    h = jnp.arange(height, dtype=jnp.float32)[:, None]               # (H, 1)
    pe_h = h / fqs                                                    # (H, dim//4)
    pe_h = jnp.concatenate([jnp.sin(pe_h), jnp.cos(pe_h)], axis=-1)   # (H, dim//2)

    w = jnp.arange(width, dtype=jnp.float32)[:, None]                 # (W, 1)
    pe_w = w / fqs                                                    # (W, dim//4)
    pe_w = jnp.concatenate([jnp.sin(pe_w), jnp.cos(pe_w)], axis=-1)   # (W, dim//2)

    pe_h = jnp.repeat(pe_h[:, None, :], width, axis=1)                # (H, W, dim//2)
    pe_w = jnp.repeat(pe_w[None, :, :], height, axis=0)               # (H, W, dim//2)
    pe_2d = jnp.concatenate([pe_h, pe_w], axis=-1)[None]              # (1, H, W, dim)
    pe_2d = jnp.transpose(pe_2d, (0, 3, 1, 2))                        # (1, dim, H, W)
    return pe_2d


# ---------------------------------------------------------------------------
# Pallas kernel: broadcast-add of the PE buffer to every batch element
# ---------------------------------------------------------------------------
def _add_pe_kernel(x_ref, pe_ref, o_ref):
    # x_ref:  (1, TR, L) or (B, M, L)   current slab of the input
    # pe_ref: (TR, L)    or (M, L)      matching PE tile (batch-invariant)
    o_ref[...] = (x_ref[...] + pe_ref[...]).astype(o_ref.dtype)


# ---------------------------------------------------------------------------
# Tiling helpers
# ---------------------------------------------------------------------------
def _physical_vmem_bytes(default: int = 64 * 2**20) -> int:
    """Physical VMEM capacity; conservative (v7x-sized) default on failure."""
    try:
        info = pltpu.get_tpu_info()
        return int(getattr(info, "vmem_capacity_bytes", default))
    except Exception:
        return default


def _vmem_limit_bytes(needed_bytes: int) -> int:
    """Request enough VMEM for the pipeline but never exceed physical - 8 MiB."""
    phys = _physical_vmem_bytes()
    cap = max(32 * 2**20, phys - 8 * 2**20)
    return int(min(cap, max(needed_bytes, 48 * 2**20)))


def _choose_row_tile(m: int, target_rows: int) -> tuple[int, int]:
    """Pick a row-tile size.  Returns (tile_rows, padded_m).

    Preference order:
      1. m itself when it already fits the target (full-extent block is legal).
      2. The largest divisor of m that is a multiple of 8 and <= target_rows
         (exact grid, no padding, no masked blocks).
      3. Otherwise pad m up by < one tile so the grid stays rectangular.
    """
    if m <= target_rows:
        return m, m
    best = 0
    i = 1
    while i * i <= m:
        if m % i == 0:
            for d in (i, m // i):
                if d % 8 == 0 and d <= target_rows and d > best:
                    best = d
        i += 1
    if best >= max(8, target_rows // 4):
        return best, m
    # No decent divisor: pick ~evenly-sized tiles and pad m to a multiple.
    n_tiles = -(-m // target_rows)          # cdiv
    tr = -(-m // n_tiles)                   # cdiv
    tr = ((tr + 7) // 8) * 8                # sublane multiple
    return tr, tr * n_tiles


# ---------------------------------------------------------------------------
# Forward pass
# ---------------------------------------------------------------------------
def pe2d_forward(x: jnp.ndarray, pe_2d: jnp.ndarray, *,
                 target_block_bytes: int = 4 * 1024 * 1024,
                 small_path_bytes: int = 2 * 1024 * 1024,
                 donate_input: bool = False) -> jnp.ndarray:
    """x: (B, C, H, W); pe_2d: (1, C, H, W)  ->  (B, C, H, W)."""
    B, C, H, W = x.shape
    assert pe_2d.shape == (1, C, H, W)
    N = C * H * W
    itemsize = jnp.dtype(x.dtype).itemsize

    if pe_2d.dtype != x.dtype:
        # Prefer caching PE in the activation dtype at construction (PE2D class);
        # this cast is a per-call fallback only.
        pe_2d = pe_2d.astype(x.dtype)

    # Lane-dense layout: pad the flattened feature axis to a multiple of 128.
    L = 128
    M = -(-N // L)                       # cdiv
    lane_pad = M * L - N

    x_flat = x.reshape(B, N)
    pe_flat = pe_2d.reshape(N)
    if lane_pad:
        x_flat = jnp.pad(x_flat, ((0, 0), (0, lane_pad)))
        pe_flat = jnp.pad(pe_flat, ((0, lane_pad),))
    x_flat = x_flat.reshape(B, M, L)
    pe_flat = pe_flat.reshape(M, L)

    io_alias = {0: 0} if donate_input else {}
    total_bytes = B * M * L * itemsize

    if total_bytes <= small_path_bytes:
        # Small-tensor fast path: one grid step, full-array blocks.
        out_flat = pl.pallas_call(
            _add_pe_kernel,
            out_shape=jax.ShapeDtypeStruct((B, M, L), x.dtype),
            grid_spec=pltpu.PrefetchScalarGridSpec(
                num_scalar_prefetch=0,
                grid=(1,),
                in_specs=[
                    pl.BlockSpec((B, M, L), lambda i: (0, 0, 0)),
                    pl.BlockSpec((M, L), lambda i: (0, 0)),
                ],
                out_specs=pl.BlockSpec((B, M, L), lambda i: (0, 0, 0)),
            ),
            compiler_params=pltpu.CompilerParams(
                vmem_limit_bytes=_vmem_limit_bytes(8 * total_bytes),
            ),
            input_output_aliases=io_alias,
        )(x_flat, pe_flat)
        M_out = M
    else:
        target_rows = max(8, target_block_bytes // (L * itemsize))
        TR, M_pad = _choose_row_tile(M, target_rows)
        if M_pad != M:
            x_flat = jnp.pad(x_flat, ((0, 0), (0, M_pad - M), (0, 0)))
            pe_flat = jnp.pad(pe_flat, ((0, M_pad - M), (0, 0)))
        n_tiles = M_pad // TR
        block_bytes = TR * L * itemsize
        # x + pe + out, each double-buffered, plus headroom.
        vmem_limit = _vmem_limit_bytes(8 * block_bytes)

        out_flat = pl.pallas_call(
            _add_pe_kernel,
            out_shape=jax.ShapeDtypeStruct((B, M_pad, L), x.dtype),
            grid_spec=pltpu.PrefetchScalarGridSpec(
                num_scalar_prefetch=0,
                # Batch is the innermost (fastest-varying) grid axis; the PE
                # index_map ignores it, so its DMA is skipped across batch.
                grid=(n_tiles, B),
                in_specs=[
                    pl.BlockSpec((1, TR, L), lambda t, b: (b, t, 0)),
                    pl.BlockSpec((TR, L), lambda t, b: (t, 0)),
                ],
                out_specs=pl.BlockSpec((1, TR, L), lambda t, b: (b, t, 0)),
            ),
            compiler_params=pltpu.CompilerParams(
                # Pure elementwise add: both axes are independent, so megacore
                # can shard along whichever has >= 2 steps (tiles or batch).
                dimension_semantics=("parallel", "parallel"),
                vmem_limit_bytes=vmem_limit,
            ),
            input_output_aliases=io_alias,
        )(x_flat, pe_flat)
        M_out = M_pad
        if M_pad != M:
            out_flat = out_flat[:, :M, :]
            M_out = M

    out = out_flat.reshape(B, M_out * L)
    if lane_pad:
        out = out[:, :N]
    return out.reshape(B, C, H, W)


class PE2D:
    """Mirrors the PyTorch module: precompute PE once, add it on every forward.

    The PE buffer is cached in `dtype` (the activation dtype) so no per-call
    convert op touches HBM.  For f32 activations this matches PyTorch exactly;
    for bf16 the add happens in bf16 (PyTorch would promote to f32) — ~1e-2
    level deviation.
    """

    def __init__(self, height: int, width: int, dim: int,
                 max_fq: float = 10000.0, dtype=jnp.float32):
        self.pe_2d = make_pe_2d(height, width, dim, max_fq).astype(dtype)

    def __call__(self, x: jnp.ndarray) -> jnp.ndarray:
        return pe2d_forward(x, self.pe_2d)


if __name__ == "__main__":
    key = jax.random.PRNGKey(0)
    k0, k1, k2 = jax.random.split(key, 3)

    # 1) Small-shape example consistent with the module (dim % 4 == 0):
    #    exercises the single-step fast path.
    B, dim, H, W = 2, 8, 16, 16
    x = jax.random.normal(k0, (B, dim, H, W), dtype=jnp.float32)
    mod = PE2D(H, W, dim)
    out = jax.block_until_ready(mod(x))
    ref = x + mod.pe_2d
    assert out.shape == (B, dim, H, W)
    assert jnp.allclose(out, ref, atol=1e-6), "small-path mismatch vs reference"

    # 2) Larger shape: exercises the tiled path (multi-tile grid, PE reuse
    #    across batch, both parallel grid axes).
    B2, dim2, H2, W2 = 2, 128, 128, 128
    x2 = jax.random.normal(k1, (B2, dim2, H2, W2), dtype=jnp.float32)
    mod2 = PE2D(H2, W2, dim2)
    out2 = jax.block_until_ready(mod2(x2))
    ref2 = x2 + mod2.pe_2d
    assert jnp.allclose(out2, ref2, atol=1e-6), "tiled-path mismatch vs reference"

    # 3) Awkward shape (C*H*W not a multiple of 128): exercises the lane-pad path.
    B3, dim3, H3, W3 = 2, 4, 5, 5
    x3 = jax.random.normal(k2, (B3, dim3, H3, W3), dtype=jnp.float32)
    mod3 = PE2D(H3, W3, dim3)
    out3 = jax.block_until_ready(mod3(x3))
    ref3 = x3 + mod3.pe_2d
    assert jnp.allclose(out3, ref3, atol=1e-6), "pad-path mismatch vs reference"

    print("KERNEL_OK")
</pallas_src>

<mosaic_0001>
module attributes {stable_mosaic.version = 11 : i64} {
  func.func @_add_pe_kernel(%arg0: i32, %arg1: memref<2x16x128xf32, #tpu.memory_space<vmem>>, %arg2: memref<16x128xf32, #tpu.memory_space<vmem>>, %arg3: memref<2x16x128xf32, #tpu.memory_space<vmem>>) attributes {dimension_semantics = [#tpu.dimension_semantics<arbitrary>], iteration_bounds = array<i64: 1>, scalar_prefetch = 0 : i64, scratch_operands = 0 : i64, tpu.core_type = #tpu.core_type<tc>, window_params = [{pipeline_mode = #tpu.pipeline_mode<synchronous>, transform_indices = @transform_0, window_bounds = array<i64: 2, 16, 128>}, {pipeline_mode = #tpu.pipeline_mode<synchronous>, transform_indices = @transform_1, window_bounds = array<i64: 16, 128>}, {pipeline_mode = #tpu.pipeline_mode<synchronous>, transform_indices = @transform_2, window_bounds = array<i64: 2, 16, 128>}]} {
    %c0 = arith.constant 0 : index
    %c0_0 = arith.constant 0 : index
    %c0_1 = arith.constant 0 : index
    %0 = vector.load %arg1[%c0, %c0_0, %c0_1] : memref<2x16x128xf32, #tpu.memory_space<vmem>>, vector<2x16x128xf32>
    %c0_2 = arith.constant 0 : index
    %c0_3 = arith.constant 0 : index
    %1 = vector.load %arg2[%c0_2, %c0_3] : memref<16x128xf32, #tpu.memory_space<vmem>>, vector<16x128xf32>
    %2 = vector.shape_cast %1 : vector<16x128xf32> to vector<1x16x128xf32>
    %3 = vector.broadcast %2 : vector<1x16x128xf32> to vector<2x16x128xf32>
    %4 = arith.addf %0, %3 : vector<2x16x128xf32>
    %c0_4 = arith.constant 0 : index
    %c0_5 = arith.constant 0 : index
    %c0_6 = arith.constant 0 : index
    %5 = vector.load %arg3[%c0_4, %c0_5, %c0_6] : memref<2x16x128xf32, #tpu.memory_space<vmem>>, vector<2x16x128xf32>
    tpu.vector_store %arg3[%c0_4, %c0_5, %c0_6], %4 {strides = array<i32>} : memref<2x16x128xf32, #tpu.memory_space<vmem>>, vector<2x16x128xf32>,
    return
  }
  func.func @transform_0(%arg0: i32) -> (i32, i32, i32) {
    %c0_i32 = arith.constant 0 : i32
    %c0_i32_0 = arith.constant 0 : i32
    %c0_i32_1 = arith.constant 0 : i32
    %c0_i32_2 = arith.constant 0 : i32
    return %c0_i32, %c0_i32_0, %c0_i32_1 : i32, i32, i32
  }
  func.func @transform_1(%arg0: i32) -> (i32, i32) {
    %c0_i32 = arith.constant 0 : i32
    %c0_i32_0 = arith.constant 0 : i32
    %c0_i32_1 = arith.constant 0 : i32
    return %c0_i32, %c0_i32_0 : i32, i32
  }
  func.func @transform_2(%arg0: i32) -> (i32, i32, i32) {
    %c0_i32 = arith.constant 0 : i32
    %c0_i32_0 = arith.constant 0 : i32
    %c0_i32_1 = arith.constant 0 : i32
    %c0_i32_2 = arith.constant 0 : i32
    return %c0_i32, %c0_i32_0, %c0_i32_1 : i32, i32, i32
  }
}

</mosaic_0001>

<bundles_post_ra>
// kernel: tpu_custom_call.1
= control target key start
LH: loop header
LB: loop body
LE: loop exit
PB: predicated region body
PF: predicated region fallthrough
CT: control target
= control target key end

     0   :  { %7 = vsyncpa [#allocation3], 0  ;;  %s199_s0 = inlined_call_operand.hbm [shape: f32[2,16,128], index: 0, kind: input, shape index: {}]   ;;  %s200_s1 = inlined_call_operand.hbm [shape: f32[16,128], index: 1, kind: input, shape index: {}]   ;;  %s201_s2 = inlined_call_operand.hbm [shape: f32[2,16,128], index: 2, kind: output, shape index: {}]  }
   0x1   :  { %8 = vsyncpa [#allocation6], 0 }
   0x2   :  { %9 = vsyncpa [#allocation4], 0  ;;  %s14_s11 = sshll.u32 %s199_s0, 4  ;;  %s161_s12 = smov [#allocation2]   ;;  %s15_s11 = int_to_ptr.hbm [resolvable:$true] %s14_s11 }
   0x3   :  { %s16_s13 = sshll.u32 %s161_s12, 4  ;;  %s27_s16 = sshll.u32 %s200_s1, 4  ;;  %s17_s13 = int_to_ptr.vmem [resolvable:$true] %s16_s13  ;;  %s28_s16 = int_to_ptr.hbm [resolvable:$true] %s27_s16 }
   0x4   :  { %s162_s17 = smov 128   ;;  %s163_s18 = smov 8  }
   0x5   :  { %22 = dma.hbm_to_vmem [thread:$0]  %s15_s11, 512, %s17_s13, [#allocation3], %s162_s17, %s162_s17, %s163_s18  }
   0x6   :  { %s164_s19 = smov [#allocation5]  }
   0x7   :  { %s29_s20 = sshll.u32 %s164_s19, 4  ;;  %s30_s20 = int_to_ptr.vmem [resolvable:$true] %s29_s20 }
   0x8   :  { %35 = dma.hbm_to_vmem [thread:$0]  %s28_s16, 256, %s30_s20, [#allocation6], %s162_s17, %s162_s17, %s163_s18  }
   0x9   :  { %155 = dma.done.wait [#allocation3], 512  }
   0xa   :  { %156 = vsyncadd [#allocation3], 4294966784 }
   0xb   :  { %157 = dma.done.wait [#allocation6], 256  }
   0xc   :  { %158 = vsyncadd [#allocation6], 4294967040  ;;  %v44_v0 = vld [vmem:[#allocation2] sm:$0xff]  ;;  %v45_v2 = vld [vmem:[#allocation2 + $0x8] sm:$0xff]  ;;  %s165_s0 = smov [#allocation7]   ;;  %s64_s23 = sshll.u32 %s201_s2, 4  ;;  %s65_s23 = int_to_ptr.hbm [resolvable:$true] %s64_s23 }
   0xd   :  { %v48_v1 = vld [vmem:[#allocation5] sm:$0xff]  ;;  %v49_v4 = vld [vmem:[#allocation5 + $0x8] sm:$0xff]  ;;  %v46_v5 = vld [vmem:[#allocation2 + $0x10] sm:$0xff]  ;;  %s62_s1 = sshll.u32 %s165_s0, 4  ;;  %s63_s1 = int_to_ptr.vmem [resolvable:$true] %s62_s1 }
   0xe   :  { %v50_v3 = vadd.f32 %v48_v1, %v44_v0  ;;  %v47_v6 = vld [vmem:[#allocation2 + $0x18] sm:$0xff]  ;;  %v51_v7 = vadd.f32 %v49_v4, %v45_v2  ;;  %v52_v8 = vadd.f32 %v48_v1, %v46_v5 }
   0xf   :  { %v53_v9 = vadd.f32 %v49_v4, %v47_v6 }
  0x10   :  { %54 = vst [vmem:[#allocation7] sm:$0xff] %v50_v3 }
  0x11   :  { %55 = vst [vmem:[#allocation7 + $0x8] sm:$0xff] %v51_v7 }
  0x12   :  { %56 = vst [vmem:[#allocation7 + $0x10] sm:$0xff] %v52_v8 }
  0x13   :  { %57 = vst [vmem:[#allocation7 + $0x18] sm:$0xff] %v53_v9 }
  0x14   :  { %70 = dma.vmem_to_hbm [thread:$0]  %s63_s1, 512, %s65_s23, [#allocation4], %s162_s17, %s162_s17, %s163_s18  }
  0x15   :  { %159 = dma.done.wait [#allocation4], 512  }
  0x16   :  { %160 = vsyncadd [#allocation4], 4294966784 }
  0x17   :  { %75 = vsyncpa [#allocation3], 1 }
  0x18   :  { %76 = vsyncpa [#allocation6], 1 }
  0x19   :  { %77 = vsyncpa [#allocation4], 1 }

</bundles_post_ra>
